<compile_context>
chip_gen: v5e
topology: v5e:2x2
jax: 0.10.0
libtpu: 0.0.40
codegen_flags: <defaults>
</compile_context>

<pallas_src>
import functools

import jax
import jax.numpy as jnp
import numpy as np
from jax.experimental import pallas as pl
from jax.experimental.pallas import tpu as pltpu


def _fold_conv3x3_weight(w_hwio, W, C):
    """Fold a (3,3,Cin,Cout) conv weight into a (3*W*Cin, W*Cout) matrix.

    With activations folded to (N*H, W*C), a stride-1/pad-1 3x3 conv is
        out = concat_kh[ row_shift(x, kh-1) ] @ W_fold
    where  W_fold[kh*W*Ci + w_in*Ci + ci, w_out*Co + co]
             = w[kh, w_in - w_out + 1, ci, co]   if |w_in - w_out| <= 1 else 0.
    """
    Ci, Co = w_hwio.shape[2], w_hwio.shape[3]
    d = jnp.arange(W)[:, None] - jnp.arange(W)[None, :]          # w_in - w_out
    valid = (jnp.abs(d) <= 1).astype(w_hwio.dtype)               # (W, W)
    kw_idx = jnp.clip(d + 1, 0, 2)                               # (W, W)
    blocks = w_hwio[:, kw_idx, :, :]                             # (3, W, W, Ci, Co)
    blocks = blocks * valid[None, :, :, None, None]
    blocks = jnp.transpose(blocks, (0, 1, 3, 2, 4))              # (3, W, Ci, W, Co)
    return blocks.reshape(3 * W * Ci, W * Co)


def basic_block_kernel(x_ref, w1_ref, w2_ref, g1_ref, b1_ref, g2_ref, b2_ref,
                       a_ref, o_ref, *, H, C):
    NH, WC = x_ref.shape              # (N*H, W*C) lane-dense folded layout
    W = WC // C
    eps = 1e-5
    inv_n = 1.0 / float(NH * W)       # 1 / (N*H*W) elements per channel

    x = x_ref[...]                    # (NH, WC) f32
    a_ch = a_ref[...]                 # (WC, WC) channel-sum / broadcast matrix

    # per-row image-height index h, lane-dense
    hh = jax.lax.broadcasted_iota(jnp.int32, (NH, WC), 0) % H

    def shift_rows(y, dh):
        # out[r, :] = y[r + dh, :] within the same image; 0 at h boundaries
        # (mask also kills rows that wrapped across batch boundaries).
        if dh == 0:
            return y
        shifted = pltpu.roll(y, shift=(-dh) % NH, axis=0)
        valid = jnp.logical_and(hh + dh >= 0, hh + dh <= H - 1)
        return jnp.where(valid, shifted, 0.0)

    def conv_bn(y, w_ref, g_ref, b_ref):
        # --- 3x3 conv as a single im2col matmul (all 9 taps folded) ---
        im2col = jnp.concatenate(
            [shift_rows(y, -1), y, shift_rows(y, 1)], axis=-1)        # (NH, 3*WC)
        out = jnp.dot(im2col, w_ref[...],
                      preferred_element_type=jnp.float32)             # (NH, WC)
        # --- single-pass BatchNorm batch stats (biased), per channel ---
        s = jnp.concatenate(
            [jnp.sum(out, axis=0, keepdims=True),
             jnp.sum(out * out, axis=0, keepdims=True)], axis=0)      # (2, WC)
        s = jnp.dot(s, a_ch, preferred_element_type=jnp.float32)      # channel sums,
        mean = s[0:1] * inv_n                                         # broadcast over w
        var = s[1:2] * inv_n - mean * mean                            # E[y^2]-mean^2 (f32)
        scale = g_ref[...] * jax.lax.rsqrt(var + eps)
        return (out - mean) * scale + b_ref[...]

    out = jnp.maximum(conv_bn(x, w1_ref, g1_ref, b1_ref), 0.0)        # conv1/bn1/relu
    out = conv_bn(out, w2_ref, g2_ref, b2_ref)                        # conv2/bn2
    out = jnp.maximum(out + x, 0.0)                                   # residual + relu
    o_ref[...] = out.astype(o_ref.dtype)                              # full-width stores


def basic_block_pallas(x_nchw, w1, g1, b1, w2, g2, b2):
    """x_nchw: (N, C, H, W) f32; w*: (3, 3, Cin, Cout) HWIO; g*, b*: (C,)."""
    N, C, H, W = x_nchw.shape
    # BasicBlock with stride=1 / downsample=None implies Cin == Cout.
    assert w1.shape == (3, 3, C, C) and w2.shape == (3, 3, C, C)
    WC = W * C

    # NCHW -> NHWC -> lane-dense fold (N*H, W*C); halo handling lives in the kernel.
    x_f = jnp.transpose(x_nchw, (0, 2, 3, 1)).reshape(N * H, WC)

    w1_f = _fold_conv3x3_weight(w1, W, C)                 # (3*WC, WC)
    w2_f = _fold_conv3x3_weight(w2, W, C)
    g1_f = jnp.tile(g1, W).reshape(1, WC)                 # lane w*C+c -> gamma[c]
    b1_f = jnp.tile(b1, W).reshape(1, WC)
    g2_f = jnp.tile(g2, W).reshape(1, WC)
    b2_f = jnp.tile(b2, W).reshape(1, WC)

    lane = jnp.arange(WC)
    a_ch = (lane[:, None] % C == lane[None, :] % C).astype(jnp.float32)  # (WC, WC)

    kernel = functools.partial(basic_block_kernel, H=H, C=C)
    vmem = pl.BlockSpec(memory_space=pltpu.MemorySpace.VMEM)
    out_f = pl.pallas_call(
        kernel,
        out_shape=jax.ShapeDtypeStruct((N * H, WC), jnp.float32),
        in_specs=[vmem] * 8,
        out_specs=vmem,
    )(x_f, w1_f, w2_f, g1_f, b1_f, g2_f, b2_f, a_ch)

    return jnp.transpose(out_f.reshape(N, H, W, C), (0, 3, 1, 2))


def basic_block_ref(x_nchw, w1, g1, b1, w2, g2, b2):
    """Pure-JAX reference (same semantics) for verification."""
    x = jnp.transpose(x_nchw, (0, 2, 3, 1))

    def conv(x, w):
        return jax.lax.conv_general_dilated(
            x, w, (1, 1), ((1, 1), (1, 1)),
            dimension_numbers=("NHWC", "HWIO", "NHWC"))

    def bn(y, g, b):
        mean = jnp.mean(y, axis=(0, 1, 2), keepdims=True)
        var = jnp.mean((y - mean) ** 2, axis=(0, 1, 2), keepdims=True)
        return (y - mean) * jax.lax.rsqrt(var + 1e-5) * g.reshape(1, 1, 1, -1) \
            + b.reshape(1, 1, 1, -1)

    out = jnp.maximum(bn(conv(x, w1), g1, b1), 0.0)
    out = bn(conv(out, w2), g2, b2) + x
    out = jnp.maximum(out, 0.0)
    return jnp.transpose(out, (0, 3, 1, 2))


if __name__ == "__main__":
    # BasicBlock(inplanes=8, planes=8, stride=1, downsample=None); W*C = 128 lanes.
    N, C, H, W = 2, 8, 16, 16
    key = jax.random.PRNGKey(0)
    kx, kw1, kw2, kg1, kb1, kg2, kb2 = jax.random.split(key, 7)

    x = jax.random.normal(kx, (N, C, H, W), jnp.float32)

    # PyTorch conv weights are (Cout, Cin, 3, 3); store HWIO for the NHWC kernel.
    w1_oihw = jax.random.normal(kw1, (C, C, 3, 3), jnp.float32) * 0.1
    w2_oihw = jax.random.normal(kw2, (C, C, 3, 3), jnp.float32) * 0.1
    w1 = jnp.transpose(w1_oihw, (2, 3, 1, 0))   # (3, 3, Cin, Cout)
    w2 = jnp.transpose(w2_oihw, (2, 3, 1, 0))

    g1 = 1.0 + 0.1 * jax.random.normal(kg1, (C,), jnp.float32)
    b1 = 0.1 * jax.random.normal(kb1, (C,), jnp.float32)
    g2 = 1.0 + 0.1 * jax.random.normal(kg2, (C,), jnp.float32)
    b2 = 0.1 * jax.random.normal(kb2, (C,), jnp.float32)

    out = basic_block_pallas(x, w1, g1, b1, w2, g2, b2)
    out = jax.block_until_ready(out)

    ref = jax.block_until_ready(basic_block_ref(x, w1, g1, b1, w2, g2, b2))
    np.testing.assert_allclose(np.asarray(out), np.asarray(ref),
                               rtol=2e-4, atol=2e-4)

    assert out.shape == (N, C, H, W)
    print("KERNEL_OK")
</pallas_src>

<mosaic_0001>
module attributes {stable_mosaic.version = 11 : i64} {
  func.func @basic_block_kernel(%arg0: memref<32x128xf32, #tpu.memory_space<vmem>>, %arg1: memref<384x128xf32, #tpu.memory_space<vmem>>, %arg2: memref<384x128xf32, #tpu.memory_space<vmem>>, %arg3: memref<1x128xf32, #tpu.memory_space<vmem>>, %arg4: memref<1x128xf32, #tpu.memory_space<vmem>>, %arg5: memref<1x128xf32, #tpu.memory_space<vmem>>, %arg6: memref<1x128xf32, #tpu.memory_space<vmem>>, %arg7: memref<128x128xf32, #tpu.memory_space<vmem>>, %arg8: memref<32x128xf32, #tpu.memory_space<vmem>>) attributes {dimension_semantics = [], scalar_prefetch = 0 : i64, scratch_operands = 0 : i64, tpu.core_type = #tpu.core_type<tc>} {
    %c0 = arith.constant 0 : index
    %c0_0 = arith.constant 0 : index
    %0 = vector.load %arg0[%c0, %c0_0] : memref<32x128xf32, #tpu.memory_space<vmem>>, vector<32x128xf32>
    %c0_1 = arith.constant 0 : index
    %c0_2 = arith.constant 0 : index
    %1 = vector.load %arg7[%c0_1, %c0_2] : memref<128x128xf32, #tpu.memory_space<vmem>>, vector<128x128xf32>
    %2 = tpu.iota {dimensions = array<i32: 0>} : vector<32x128xi32>
    %c16_i32 = arith.constant 16 : i32
    %c0_i32 = arith.constant 0 : i32
    %3 = arith.cmpi eq, %c16_i32, %c0_i32 : i32
    %c1_i32 = arith.constant 1 : i32
    %4 = arith.select %3, %c1_i32, %c16_i32 : i32
    %5 = vector.broadcast %4 : i32 to vector<32x128xi32>
    %6 = arith.remsi %2, %5 : vector<32x128xi32>
    %c0_i32_3 = arith.constant 0 : i32
    %7 = vector.broadcast %c0_i32_3 : i32 to vector<32x128xi32>
    %8 = arith.cmpi ne, %6, %7 : vector<32x128xi32>
    %c0_i32_4 = arith.constant 0 : i32
    %9 = vector.broadcast %c0_i32_4 : i32 to vector<32x128xi32>
    %10 = arith.cmpi slt, %6, %9 : vector<32x128xi32>
    %c0_i32_5 = arith.constant 0 : i32
    %11 = arith.cmpi slt, %4, %c0_i32_5 : i32
    %12 = vector.broadcast %11 : i1 to vector<32x128xi1>
    %13 = vector.broadcast %12 : vector<32x128xi1> to vector<32x128xi1>
    %14 = arith.xori %10, %13 : vector<32x128xi1>
    %15 = arith.andi %14, %8 : vector<32x128xi1>
    %16 = vector.broadcast %4 : i32 to vector<32x128xi32>
    %17 = arith.addi %6, %16 : vector<32x128xi32>
    %18 = arith.select %15, %17, %6 : vector<32x128xi1>, vector<32x128xi32>
    %c1_i32_6 = arith.constant 1 : i32
    %19 = tpu.dynamic_rotate %0 by %c1_i32_6 dim 0 : vector<32x128xf32>, i32 -> vector<32x128xf32>
    %c-1_i32 = arith.constant -1 : i32
    %20 = vector.broadcast %c-1_i32 : i32 to vector<32x128xi32>
    %21 = arith.addi %18, %20 : vector<32x128xi32>
    %c0_i32_7 = arith.constant 0 : i32
    %22 = vector.broadcast %c0_i32_7 : i32 to vector<32x128xi32>
    %23 = arith.cmpi sge, %21, %22 : vector<32x128xi32>
    %c-1_i32_8 = arith.constant -1 : i32
    %24 = vector.broadcast %c-1_i32_8 : i32 to vector<32x128xi32>
    %25 = arith.addi %18, %24 : vector<32x128xi32>
    %c15_i32 = arith.constant 15 : i32
    %26 = vector.broadcast %c15_i32 : i32 to vector<32x128xi32>
    %27 = arith.cmpi sle, %25, %26 : vector<32x128xi32>
    %28 = arith.andi %23, %27 : vector<32x128xi1>
    %cst = arith.constant 0.000000e+00 : f32
    %29 = vector.broadcast %cst : f32 to vector<32x128xf32>
    %30 = arith.select %28, %19, %29 : vector<32x128xi1>, vector<32x128xf32>
    %c31_i32 = arith.constant 31 : i32
    %31 = tpu.dynamic_rotate %0 by %c31_i32 dim 0 : vector<32x128xf32>, i32 -> vector<32x128xf32>
    %c1_i32_9 = arith.constant 1 : i32
    %32 = vector.broadcast %c1_i32_9 : i32 to vector<32x128xi32>
    %33 = arith.addi %18, %32 : vector<32x128xi32>
    %c0_i32_10 = arith.constant 0 : i32
    %34 = vector.broadcast %c0_i32_10 : i32 to vector<32x128xi32>
    %35 = arith.cmpi sge, %33, %34 : vector<32x128xi32>
    %c1_i32_11 = arith.constant 1 : i32
    %36 = vector.broadcast %c1_i32_11 : i32 to vector<32x128xi32>
    %37 = arith.addi %18, %36 : vector<32x128xi32>
    %c15_i32_12 = arith.constant 15 : i32
    %38 = vector.broadcast %c15_i32_12 : i32 to vector<32x128xi32>
    %39 = arith.cmpi sle, %37, %38 : vector<32x128xi32>
    %40 = arith.andi %35, %39 : vector<32x128xi1>
    %cst_13 = arith.constant 0.000000e+00 : f32
    %41 = vector.broadcast %cst_13 : f32 to vector<32x128xf32>
    %42 = arith.select %40, %31, %41 : vector<32x128xi1>, vector<32x128xf32>
    %43 = tpu.concatenate %30, %0, %42 in 1 : vector<32x128xf32>, vector<32x128xf32>, vector<32x128xf32> -> vector<32x384xf32>
    %c0_14 = arith.constant 0 : index
    %c0_15 = arith.constant 0 : index
    %44 = vector.load %arg1[%c0_14, %c0_15] : memref<384x128xf32, #tpu.memory_space<vmem>>, vector<384x128xf32>
    %cst_16 = arith.constant dense<0.000000e+00> : vector<32x128xf32>
    %45 = tpu.matmul %43, %44, %cst_16 {dimension_numbers = #tpu.dot_dimension_numbers<[1], [0], [0], [1], [0, 0, 1, 1], [], []>} : vector<32x384xf32>, vector<384x128xf32>, vector<32x128xf32> -> vector<32x128xf32>
    %cst_17 = arith.constant dense<0.000000e+00> : vector<128xf32>
    %46 = vector.multi_reduction <add>, %45, %cst_17 [0] : vector<32x128xf32> to vector<128xf32>
    %47 = vector.shape_cast %46 : vector<128xf32> to vector<1x128xf32>
    %48 = arith.mulf %45, %45 : vector<32x128xf32>
    %cst_18 = arith.constant dense<0.000000e+00> : vector<128xf32>
    %49 = vector.multi_reduction <add>, %48, %cst_18 [0] : vector<32x128xf32> to vector<128xf32>
    %50 = vector.shape_cast %49 : vector<128xf32> to vector<1x128xf32>
    %51 = tpu.concatenate %47, %50 in 0 : vector<1x128xf32>, vector<1x128xf32> -> vector<2x128xf32>
    %cst_19 = arith.constant dense<0.000000e+00> : vector<2x128xf32>
    %52 = tpu.matmul %51, %1, %cst_19 {dimension_numbers = #tpu.dot_dimension_numbers<[1], [0], [0], [1], [0, 0, 1, 1], [], []>} : vector<2x128xf32>, vector<128x128xf32>, vector<2x128xf32> -> vector<2x128xf32>
    %53 = vector.extract_strided_slice %52 {offsets = [0, 0], sizes = [1, 128], strides = [1, 1]} : vector<2x128xf32> to vector<1x128xf32>
    %cst_20 = arith.constant 0.001953125 : f32
    %54 = vector.broadcast %cst_20 : f32 to vector<1x128xf32>
    %55 = arith.mulf %53, %54 : vector<1x128xf32>
    %56 = vector.extract_strided_slice %52 {offsets = [1, 0], sizes = [1, 128], strides = [1, 1]} : vector<2x128xf32> to vector<1x128xf32>
    %cst_21 = arith.constant 0.001953125 : f32
    %57 = vector.broadcast %cst_21 : f32 to vector<1x128xf32>
    %58 = arith.mulf %56, %57 : vector<1x128xf32>
    %59 = arith.mulf %55, %55 : vector<1x128xf32>
    %60 = arith.subf %58, %59 : vector<1x128xf32>
    %c0_22 = arith.constant 0 : index
    %c0_23 = arith.constant 0 : index
    %61 = vector.load %arg3[%c0_22, %c0_23] : memref<1x128xf32, #tpu.memory_space<vmem>>, vector<1x128xf32>
    %cst_24 = arith.constant 9.99999974E-6 : f32
    %62 = vector.broadcast %cst_24 : f32 to vector<1x128xf32>
    %63 = arith.addf %60, %62 : vector<1x128xf32>
    %64 = math.rsqrt %63 : vector<1x128xf32>
    %65 = arith.mulf %61, %64 : vector<1x128xf32>
    %66 = vector.broadcast %55 : vector<1x128xf32> to vector<32x128xf32>
    %67 = arith.subf %45, %66 : vector<32x128xf32>
    %68 = vector.broadcast %65 : vector<1x128xf32> to vector<32x128xf32>
    %69 = arith.mulf %67, %68 : vector<32x128xf32>
    %c0_25 = arith.constant 0 : index
    %c0_26 = arith.constant 0 : index
    %70 = vector.load %arg4[%c0_25, %c0_26] : memref<1x128xf32, #tpu.memory_space<vmem>>, vector<1x128xf32>
    %71 = vector.broadcast %70 : vector<1x128xf32> to vector<32x128xf32>
    %72 = arith.addf %69, %71 : vector<32x128xf32>
    %cst_27 = arith.constant 0.000000e+00 : f32
    %73 = vector.broadcast %cst_27 : f32 to vector<32x128xf32>
    %74 = arith.maximumf %72, %73 : vector<32x128xf32>
    %c1_i32_28 = arith.constant 1 : i32
    %75 = tpu.dynamic_rotate %74 by %c1_i32_28 dim 0 : vector<32x128xf32>, i32 -> vector<32x128xf32>
    %c-1_i32_29 = arith.constant -1 : i32
    %76 = vector.broadcast %c-1_i32_29 : i32 to vector<32x128xi32>
    %77 = arith.addi %18, %76 : vector<32x128xi32>
    %c0_i32_30 = arith.constant 0 : i32
    %78 = vector.broadcast %c0_i32_30 : i32 to vector<32x128xi32>
    %79 = arith.cmpi sge, %77, %78 : vector<32x128xi32>
    %c-1_i32_31 = arith.constant -1 : i32
    %80 = vector.broadcast %c-1_i32_31 : i32 to vector<32x128xi32>
    %81 = arith.addi %18, %80 : vector<32x128xi32>
    %c15_i32_32 = arith.constant 15 : i32
    %82 = vector.broadcast %c15_i32_32 : i32 to vector<32x128xi32>
    %83 = arith.cmpi sle, %81, %82 : vector<32x128xi32>
    %84 = arith.andi %79, %83 : vector<32x128xi1>
    %cst_33 = arith.constant 0.000000e+00 : f32
    %85 = vector.broadcast %cst_33 : f32 to vector<32x128xf32>
    %86 = arith.select %84, %75, %85 : vector<32x128xi1>, vector<32x128xf32>
    %c31_i32_34 = arith.constant 31 : i32
    %87 = tpu.dynamic_rotate %74 by %c31_i32_34 dim 0 : vector<32x128xf32>, i32 -> vector<32x128xf32>
    %c1_i32_35 = arith.constant 1 : i32
    %88 = vector.broadcast %c1_i32_35 : i32 to vector<32x128xi32>
    %89 = arith.addi %18, %88 : vector<32x128xi32>
    %c0_i32_36 = arith.constant 0 : i32
    %90 = vector.broadcast %c0_i32_36 : i32 to vector<32x128xi32>
    %91 = arith.cmpi sge, %89, %90 : vector<32x128xi32>
    %c1_i32_37 = arith.constant 1 : i32
    %92 = vector.broadcast %c1_i32_37 : i32 to vector<32x128xi32>
    %93 = arith.addi %18, %92 : vector<32x128xi32>
    %c15_i32_38 = arith.constant 15 : i32
    %94 = vector.broadcast %c15_i32_38 : i32 to vector<32x128xi32>
    %95 = arith.cmpi sle, %93, %94 : vector<32x128xi32>
    %96 = arith.andi %91, %95 : vector<32x128xi1>
    %cst_39 = arith.constant 0.000000e+00 : f32
    %97 = vector.broadcast %cst_39 : f32 to vector<32x128xf32>
    %98 = arith.select %96, %87, %97 : vector<32x128xi1>, vector<32x128xf32>
    %99 = tpu.concatenate %86, %74, %98 in 1 : vector<32x128xf32>, vector<32x128xf32>, vector<32x128xf32> -> vector<32x384xf32>
    %c0_40 = arith.constant 0 : index
    %c0_41 = arith.constant 0 : index
    %100 = vector.load %arg2[%c0_40, %c0_41] : memref<384x128xf32, #tpu.memory_space<vmem>>, vector<384x128xf32>
    %cst_42 = arith.constant dense<0.000000e+00> : vector<32x128xf32>
    %101 = tpu.matmul %99, %100, %cst_42 {dimension_numbers = #tpu.dot_dimension_numbers<[1], [0], [0], [1], [0, 0, 1, 1], [], []>} : vector<32x384xf32>, vector<384x128xf32>, vector<32x128xf32> -> vector<32x128xf32>
    %cst_43 = arith.constant dense<0.000000e+00> : vector<128xf32>
    %102 = vector.multi_reduction <add>, %101, %cst_43 [0] : vector<32x128xf32> to vector<128xf32>
    %103 = vector.shape_cast %102 : vector<128xf32> to vector<1x128xf32>
    %104 = arith.mulf %101, %101 : vector<32x128xf32>
    %cst_44 = arith.constant dense<0.000000e+00> : vector<128xf32>
    %105 = vector.multi_reduction <add>, %104, %cst_44 [0] : vector<32x128xf32> to vector<128xf32>
    %106 = vector.shape_cast %105 : vector<128xf32> to vector<1x128xf32>
    %107 = tpu.concatenate %103, %106 in 0 : vector<1x128xf32>, vector<1x128xf32> -> vector<2x128xf32>
    %cst_45 = arith.constant dense<0.000000e+00> : vector<2x128xf32>
    %108 = tpu.matmul %107, %1, %cst_45 {dimension_numbers = #tpu.dot_dimension_numbers<[1], [0], [0], [1], [0, 0, 1, 1], [], []>} : vector<2x128xf32>, vector<128x128xf32>, vector<2x128xf32> -> vector<2x128xf32>
    %109 = vector.extract_strided_slice %108 {offsets = [0, 0], sizes = [1, 128], strides = [1, 1]} : vector<2x128xf32> to vector<1x128xf32>
    %cst_46 = arith.constant 0.001953125 : f32
    %110 = vector.broadcast %cst_46 : f32 to vector<1x128xf32>
    %111 = arith.mulf %109, %110 : vector<1x128xf32>
    %112 = vector.extract_strided_slice %108 {offsets = [1, 0], sizes = [1, 128], strides = [1, 1]} : vector<2x128xf32> to vector<1x128xf32>
    %cst_47 = arith.constant 0.001953125 : f32
    %113 = vector.broadcast %cst_47 : f32 to vector<1x128xf32>
    %114 = arith.mulf %112, %113 : vector<1x128xf32>
    %115 = arith.mulf %111, %111 : vector<1x128xf32>
    %116 = arith.subf %114, %115 : vector<1x128xf32>
    %c0_48 = arith.constant 0 : index
    %c0_49 = arith.constant 0 : index
    %117 = vector.load %arg5[%c0_48, %c0_49] : memref<1x128xf32, #tpu.memory_space<vmem>>, vector<1x128xf32>
    %cst_50 = arith.constant 9.99999974E-6 : f32
    %118 = vector.broadcast %cst_50 : f32 to vector<1x128xf32>
    %119 = arith.addf %116, %118 : vector<1x128xf32>
    %120 = math.rsqrt %119 : vector<1x128xf32>
    %121 = arith.mulf %117, %120 : vector<1x128xf32>
    %122 = vector.broadcast %111 : vector<1x128xf32> to vector<32x128xf32>
    %123 = arith.subf %101, %122 : vector<32x128xf32>
    %124 = vector.broadcast %121 : vector<1x128xf32> to vector<32x128xf32>
    %125 = arith.mulf %123, %124 : vector<32x128xf32>
    %c0_51 = arith.constant 0 : index
    %c0_52 = arith.constant 0 : index
    %126 = vector.load %arg6[%c0_51, %c0_52] : memref<1x128xf32, #tpu.memory_space<vmem>>, vector<1x128xf32>
    %127 = vector.broadcast %126 : vector<1x128xf32> to vector<32x128xf32>
    %128 = arith.addf %125, %127 : vector<32x128xf32>
    %129 = arith.addf %128, %0 : vector<32x128xf32>
    %cst_53 = arith.constant 0.000000e+00 : f32
    %130 = vector.broadcast %cst_53 : f32 to vector<32x128xf32>
    %131 = arith.maximumf %129, %130 : vector<32x128xf32>
    %c0_54 = arith.constant 0 : index
    %c0_55 = arith.constant 0 : index
    %132 = vector.load %arg8[%c0_54, %c0_55] : memref<32x128xf32, #tpu.memory_space<vmem>>, vector<32x128xf32>
    tpu.vector_store %arg8[%c0_54, %c0_55], %131 {strides = array<i32>} : memref<32x128xf32, #tpu.memory_space<vmem>>, vector<32x128xf32>,
    return
  }
}

</mosaic_0001>

<bundles_post_ra>
// kernel: tpu_custom_call.1
= control target key start
LH: loop header
LB: loop body
LE: loop exit
PB: predicated region body
PF: predicated region fallthrough
CT: control target
= control target key end

     0   :  { %13 = vsyncpa [#allocation3], 0  ;;  %s1097_s0 = inlined_call_operand.hbm [shape: f32[32,128], index: 0, kind: input, shape index: {}]   ;;  %s1098_s1 = inlined_call_operand.hbm [shape: f32[384,128], index: 1, kind: input, shape index: {}]   ;;  %s1099_s2 = inlined_call_operand.hbm [shape: f32[384,128], index: 2, kind: input, shape index: {}]   ;;  %s1100_s3 = inlined_call_operand.vmem [shape: f32[1,128], index: 3, kind: input, shape index: {}]   ;;  %s1101_s4 = inlined_call_operand.vmem [shape: f32[1,128], index: 4, kind: input, shape index: {}]   ;;  %s1102_s5 = inlined_call_operand.vmem [shape: f32[1,128], index: 5, kind: input, shape index: {}]   ;;  %s1103_s6 = inlined_call_operand.vmem [shape: f32[1,128], index: 6, kind: input, shape index: {}]   ;;  %s1104_s7 = inlined_call_operand.hbm [shape: f32[128,128], index: 7, kind: input, shape index: {}]   ;;  %s1105_s8 = inlined_call_operand.hbm [shape: f32[32,128], index: 8, kind: output, shape index: {}]  }
   0x1   :  { %14 = vsyncpa [#allocation6], 0 }
   0x2   :  { %15 = vsyncpa [#allocation9], 0 }
   0x3   :  { %16 = vsyncpa [#allocation4], 0  ;;  %s34_s29 = sshll.u32 %s1098_s1, 4  ;;  %s879_s30 = smov [#allocation5]   ;;  %s35_s29 = int_to_ptr.hbm [resolvable:$true] %s34_s29 }
   0x4   :  { %s36_s9 = sshll.u32 %s879_s30, 4  ;;  %s21_s12 = sshll.u32 %s1097_s0, 4  ;;  %s37_s9 = int_to_ptr.vmem [resolvable:$true] %s36_s9  ;;  %s22_s12 = int_to_ptr.hbm [resolvable:$true] %s21_s12 }
   0x5   :  { %s880_s13 = smov 128   ;;  %s881_s14 = smov 8  }
   0x6   :  { %42 = dma.hbm_to_vmem [thread:$0]  %s35_s29, 6144, %s37_s9, [#allocation6], %s880_s13, %s880_s13, %s881_s14  }
   0x7   :  { %s882_s15 = smov [#allocation2]   ;;  %s47_s1 = sshll.u32 %s1099_s2, 4  ;;  %s48_s1 = int_to_ptr.hbm [resolvable:$true] %s47_s1 }
   0x8   :  { %s23_s16 = sshll.u32 %s882_s15, 4  ;;  %s68_s20 = sshll.u32 %s1104_s7, 4  ;;  %s24_s16 = int_to_ptr.vmem [resolvable:$true] %s23_s16  ;;  %s69_s20 = int_to_ptr.hbm [resolvable:$true] %s68_s20 }
   0x9   :  { %29 = dma.hbm_to_vmem [thread:$0]  %s22_s12, 512, %s24_s16, [#allocation3], %s880_s13, %s880_s13, %s881_s14  }
   0xa   :  { %s883_s21 = smov [#allocation7]   ;;  %s884_s23 = smov [#allocation8]  }
   0xb   :  { %s49_s22 = sshll.u32 %s883_s21, 4  ;;  %s70_s2 = sshll.u32 %s884_s23, 4  ;;  %s50_s22 = int_to_ptr.vmem [resolvable:$true] %s49_s22  ;;  %s71_s2 = int_to_ptr.vmem [resolvable:$true] %s70_s2 }
   0xc   :  { %55 = dma.hbm_to_vmem [thread:$0]  %s48_s1, 6144, %s50_s22, [#allocation6], %s880_s13, %s880_s13, %s881_s14  }
   0xd   :  { %76 = dma.hbm_to_vmem [thread:$0]  %s69_s20, 2048, %s71_s2, [#allocation9], %s880_s13, %s880_s13, %s881_s14  }
   0xe   :  { %871 = dma.done.wait [#allocation3], 512  }
   0xf   :  { %872 = vsyncadd [#allocation3], 4294966784 }
  0x10   :  { %873 = dma.done.wait [#allocation6], 12288  }
  0x11   :  { %874 = vsyncadd [#allocation6], 4294955008 }
  0x12   :  { %875 = dma.done.wait [#allocation9], 2048  }
  0x13   :  { %876 = vsyncadd [#allocation9], 4294965248  ;;  %v271_v0 = vld [vmem:[#allocation5 + $0x178] sm:$0xff]  ;;  %v270_v1 = vld [vmem:[#allocation5 + $0x170] sm:$0xff]  ;;  %v113_v26 = vlaneseq  ;;  %vm381_vm6 = vcmask 1040384   ;;  %s715_s9 = sshll.u32 %s1105_s8, 4  ;;  %s716_s9 = int_to_ptr.hbm [resolvable:$true] %s715_s9 }
  0x14   :  { %v239_v2 = vld [vmem:[#allocation5 + $0x78] sm:$0xff]  ;;  %330 = vmatpush.msra.mxu2 %v271_v0  ;;  %v238_v4 = vld [vmem:[#allocation5 + $0x70] sm:$0xff]  ;;  %v269_v5 = vld [vmem:[#allocation5 + $0x168] sm:$0xff] }
  0x15   :  { %272 = vmatpush.msra.mxu0 %v239_v2  ;;  %v255_v3 = vld [vmem:[#allocation5 + $0xf8] sm:$0xff]  ;;  %v254_v6 = vld [vmem:[#allocation5 + $0xf0] sm:$0xff]  ;;  %v237_v7 = vld [vmem:[#allocation5 + $0x68] sm:$0xff]  ;;  %v955_v33 = vshrl.u32 %v113_v26, 7 }
  0x16   :  { %301 = vmatpush.msra.mxu1 %v255_v3  ;;  %331 = vmatpush.msra.mxu2 %v270_v1  ;;  %v253_v8 = vld [vmem:[#allocation5 + $0xe8] sm:$0xff]  ;;  %v268_v9 = vld [vmem:[#allocation5 + $0x160] sm:$0xff]  ;;  %v267_v12 = vld [vmem:[#allocation5 + $0x158] sm:$0xff] }
  0x17   :  { %273 = vmatpush.msra.mxu0 %v238_v4  ;;  %v236_v10 = vld [vmem:[#allocation5 + $0x60] sm:$0xff]  ;;  %v235_v13 = vld [vmem:[#allocation5 + $0x58] sm:$0xff]  ;;  %v266_v15 = vld [vmem:[#allocation5 + $0x150] sm:$0xff]  ;;  %v122_v42 = vand.u32 15, %v955_v33  ;;  %v115_v50 = vadd.s32 8, %v955_v33  ;;  %vm199_vm0 = vcmp.lt.s32.totalorder %v955_v33, 7 }
  0x18   :  { %302 = vmatpush.msra.mxu1 %v254_v6  ;;  %332 = vmatpush.msra.mxu2 %v269_v5  ;;  %v252_v11 = vld [vmem:[#allocation5 + $0xe0] sm:$0xff]  ;;  %v251_v14 = vld [vmem:[#allocation5 + $0xd8] sm:$0xff]  ;;  %v234_v16 = vld [vmem:[#allocation5 + $0x50] sm:$0xff]  ;;  %vm170_vm1 = vcmp.lt.s32.totalorder %v955_v33, 1  ;;  %v116_v3 = vadd.s32 16, %v955_v33 }
  0x19   :  { %274 = vmatpush.msra.mxu0 %v237_v7  ;;  %v250_v17 = vld [vmem:[#allocation5 + $0xd0] sm:$0xff]  ;;  %v265_v18 = vld [vmem:[#allocation5 + $0x148] sm:$0xff]  ;;  %v264_v21 = vld [vmem:[#allocation5 + $0x140] sm:$0xff]  ;;  %v970_v55 = vadd.s32 4294967295, %v122_v42  ;;  %v129_v61 = vand.u32 15, %v115_v50 }
  0x1a   :  { %303 = vmatpush.msra.mxu1 %v253_v8  ;;  %333 = vmatpush.msra.mxu2 %v268_v9  ;;  %v233_v19 = vld [vmem:[#allocation5 + $0x48] sm:$0xff]  ;;  %v232_v22 = vld [vmem:[#allocation5 + $0x40] sm:$0xff]  ;;  %v263_v24 = vld [vmem:[#allocation5 + $0x138] sm:$0xff]  ;;  %v136_v6 = vand.u32 15, %v116_v3  ;;  %v117_v8 = vadd.s32 24, %v955_v33 }
  0x1b   :  { %275 = vmatpush.msra.mxu0 %v236_v10  ;;  %v249_v20 = vld [vmem:[#allocation5 + $0xc8] sm:$0xff]  ;;  %v248_v23 = vld [vmem:[#allocation5 + $0xc0] sm:$0xff]  ;;  %v231_v25 = vld [vmem:[#allocation5 + $0x38] sm:$0xff]  ;;  %vm179_vm2 = vcmp.ge.s32.totalorder %v970_v55, 0  ;;  %v984_v1 = vadd.s32 1, %v129_v61 }
  0x1c   :  { %304 = vmatpush.msra.mxu1 %v252_v11  ;;  %334 = vmatpush.msra.mxu2 %v267_v12  ;;  %v247_v27 = vld [vmem:[#allocation5 + $0xb8] sm:$0xff]  ;;  %v262_v28 = vld [vmem:[#allocation5 + $0x130] sm:$0xff]  ;;  %v261_v30 = vld [vmem:[#allocation5 + $0x128] sm:$0xff]  ;;  %v999_v10 = vadd.s32 4294967295, %v136_v6  ;;  %v143_v12 = vand.u32 15, %v117_v8 }
  0x1d   :  { %276 = vmatpush.msra.mxu0 %v235_v13  ;;  %v230_v29 = vld [vmem:[#allocation5 + $0x30] sm:$0xff]  ;;  %v229_v32 = vld [vmem:[#allocation5 + $0x28] sm:$0xff]  ;;  %v260_v35 = vld [vmem:[#allocation5 + $0x120] sm:$0xff]  ;;  %vm213_vm3 = vcmp.le.s32.totalorder %v984_v1, 15 }
  0x1e   :  { %305 = vmatpush.msra.mxu1 %v251_v14  ;;  %335 = vmatpush.msra.mxu2 %v266_v15  ;;  %v246_v31 = vld [vmem:[#allocation5 + $0xb0] sm:$0xff]  ;;  %v245_v34 = vld [vmem:[#allocation5 + $0xa8] sm:$0xff]  ;;  %v228_v36 = vld [vmem:[#allocation5 + $0x20] sm:$0xff]  ;;  %vm181_vm4 = vcmp.ge.s32.totalorder %v999_v10, 0  ;;  %v1009_v14 = vadd.s32 1, %v143_v12 }
  0x1f   :  { %277 = vmatpush.msra.mxu0 %v234_v16  ;;  %v259_v37 = vld [vmem:[#allocation5 + $0x118] sm:$0xff]  ;;  %v244_v38 = vld [vmem:[#allocation5 + $0xa0] sm:$0xff]  ;;  %v959_v41 = vld [vmem:[#allocation2 + $0x8] sm:$0xff] }
  0x20   :  { %306 = vmatpush.msra.mxu1 %v250_v17  ;;  %336 = vmatpush.msra.mxu2 %v265_v18  ;;  %v227_v39 = vld [vmem:[#allocation5 + $0x18] sm:$0xff]  ;;  %v957_v40 = vld [vmem:[#allocation2] sm:$0xff]  ;;  %v258_v45 = vld [vmem:[#allocation5 + $0x110] sm:$0xff]  ;;  %v196_v49 = vrot.slane %v959_v41, 1  ;;  %v167_v2 = vrot.slane %v959_v41, 7  ;;  %vm215_vm5 = vcmp.le.s32.totalorder %v1009_v14, 15 }
  0x21   :  { %278 = vmatpush.msra.mxu0 %v233_v19  ;;  %v243_v43 = vld [vmem:[#allocation5 + $0x98] sm:$0xff]  ;;  %v226_v46 = vld [vmem:[#allocation5 + $0x10] sm:$0xff]  ;;  %v195_v48 = vrot.slane %v957_v40, 1  ;;  %v257_v51 = vld [vmem:[#allocation5 + $0x108] sm:$0xff]  ;;  %v166_v53 = vrot.slane %v957_v40, 7 }
  0x22   :  { %307 = vmatpush.msra.mxu1 %v249_v20  ;;  %337 = vmatpush.msra.mxu2 %v264_v21  ;;  %v962_v44 = vld [vmem:[#allocation2 + $0x18] sm:$0xff]  ;;  %v242_v47 = vld [vmem:[#allocation5 + $0x90] sm:$0xff]  ;;  %v225_v52 = vld [vmem:[#allocation5 + $0x8] sm:$0xff] }
  0x23   :  { %279 = vmatpush.msra.mxu0 %v232_v22  ;;  %v169_v54 = vrot.slane %v962_v44, 7  ;;  %v241_v56 = vld [vmem:[#allocation5 + $0x88] sm:$0xff]  ;;  %v256_v57 = vld [vmem:[#allocation5 + $0x100] sm:$0xff]  ;;  %v202_v59 = vsel %vm199_vm0, %v195_v48, %v196_v49  ;;  %v978_v63 = vld [vmem:[#allocation2 + $0x10] sm:$0xff]  ;;  %v173_v5 = vsel %vm170_vm1, %v166_v53, %v167_v2  ;;  %v198_v7 = vrot.slane %v962_v44, 1 }
  0x24   :  { %308 = vmatpush.msra.mxu1 %v248_v23  ;;  %338 = vmatpush.msra.mxu2 %v263_v24  ;;  %v224_v58 = vld [vmem:[#allocation5] sm:$0xff]  ;;  %v197_v0 = vrot.slane %v978_v63, 1  ;;  %v168_v9 = vrot.slane %v978_v63, 7  ;;  %v112_v17 = vld [vmem:[#allocation8 + $0x78] sm:$0xff]  ;;  %v111_v18 = vld [vmem:[#allocation8 + $0x70] sm:$0xff] }
  0x25   :  { %280 = vmatpush.msra.mxu0 %v231_v25  ;;  %v240_v60 = vld [vmem:[#allocation5 + $0x80] sm:$0xff]  ;;  %v174_v62 = vsel %vm170_vm1, %v169_v54, %v166_v53  ;;  %v203_v15 = vsel %vm199_vm0, %v198_v7, %v195_v48  ;;  %383 = vmatpush.msra.mxu3 %v112_v17  ;;  %v110_v19 = vld [vmem:[#allocation8 + $0x68] sm:$0xff]  ;;  %v108_v21 = vld [vmem:[#allocation8 + $0x58] sm:$0xff] }
  0x26   :  { %309 = vmatpush.msra.mxu1 %v247_v27  ;;  %339 = vmatpush.msra.mxu2 %v262_v28  ;;  %v201_v4 = vsel %vm199_vm0, %v196_v49, %v197_v0  ;;  %v200_v11 = vsel %vm199_vm0, %v197_v0, %v198_v7  ;;  %v172_v13 = vsel %vm170_vm1, %v167_v2, %v168_v9  ;;  %v109_v20 = vld [vmem:[#allocation8 + $0x60] sm:$0xff]  ;;  %v107_v22 = vld [vmem:[#allocation8 + $0x50] sm:$0xff]  ;;  %v106_v23 = vld [vmem:[#allocation8 + $0x48] sm:$0xff] }
  0x27   :  { %281 = vmatpush.msra.mxu0 %v230_v29  ;;  %v171_v16 = vsel %vm170_vm1, %v168_v9, %v169_v54  ;;  %384 = vmatpush.msra.mxu3 %v111_v18  ;;  %v105_v24 = vld [vmem:[#allocation8 + $0x40] sm:$0xff]  ;;  %v104_v27 = vld [vmem:[#allocation8 + $0x38] sm:$0xff]  ;;  %v103_v28 = vld [vmem:[#allocation8 + $0x30] sm:$0xff] }
  0x28   :  { %310 = vmatpush.msra.mxu1 %v246_v31  ;;  %340 = vmatpush.msra.mxu2 %v261_v30  ;;  %v102_v29 = vld [vmem:[#allocation8 + $0x28] sm:$0xff]  ;;  %v101_v31 = vld [vmem:[#allocation8 + $0x20] sm:$0xff] }
  0x29   :  { %282 = vmatpush.msra.mxu0 %v229_v32  ;;  %385 = vmatpush.msra.mxu3 %v110_v19  ;;  %v100_v32 = vld [vmem:[#allocation8 + $0x18] sm:$0xff] }
  0x2a   :  { %311 = vmatpush.msra.mxu1 %v245_v34  ;;  %341 = vmatpush.msra.mxu2 %v260_v35 }
  0x2b   :  { %283 = vmatpush.msra.mxu0 %v228_v36  ;;  %386 = vmatpush.msra.mxu3 %v109_v20  ;;  %v99_v36 = vld [vmem:[#allocation8 + $0x10] sm:$0xff] }
  0x2c   :  { %312 = vmatpush.msra.mxu1 %v244_v38  ;;  %342 = vmatpush.msra.mxu2 %v259_v37  ;;  %v98_v37 = vld [vmem:[#allocation8 + $0x8] sm:$0xff] }
  0x2d   :  { %284 = vmatpush.msra.mxu0 %v227_v39  ;;  %387 = vmatpush.msra.mxu3 %v108_v21  ;;  %v97_v39 = vld [vmem:[#allocation8] sm:$0xff] }
  0x2e   :  { %313 = vmatpush.msra.mxu1 %v243_v43  ;;  %343 = vmatpush.msra.mxu2 %v258_v45 }
  0x2f   :  { %285 = vmatpush.msra.mxu0 %v226_v46  ;;  %388 = vmatpush.msra.mxu3 %v107_v22 }
  0x30   :  { %314 = vmatpush.msra.mxu1 %v242_v47  ;;  %344 = vmatpush.msra.mxu2 %v257_v51 }
  0x31   :  { %286 = vmatpush.msra.mxu0 %v225_v52  ;;  %389 = vmatpush.msra.mxu3 %v106_v23 }
  0x32   :  { %315 = vmatpush.msra.mxu1 %v241_v56  ;;  %345 = vmatpush.msra.mxu2 %v256_v57 }
  0x33   :  { %287 = vmatpush.msra.mxu0 %v224_v58  ;;  %346 = vmatmul.f32.vlgmr.msra.gmra.mxu2 %v202_v59 }
  0x34   :  { %316 = vmatpush.msra.mxu1 %v240_v60  ;;  %730 = vmatmul.msk.f32.vlgmr.msra.gmra.mxu0 %vm179_vm2, %v174_v62 }
  0x35   :  { %317 = vmatmul.f32.vlgmr.msra.gmra.mxu1 %v957_v40  ;;  %390 = vmatpush.msra.mxu3 %v105_v24 }
  0x37   :  { %391 = vmatpush.msra.mxu3 %v104_v27 }
  0x39   :  { %392 = vmatpush.msra.mxu3 %v103_v28 }
  0x3b   :  { %732 = vmatmul.msk.f32.gmra.mxu2 %vm213_vm3, %v201_v4  ;;  %393 = vmatpush.msra.mxu3 %v102_v29 }
  0x3c   :  { %291 = vmatmul.f32.gmra.mxu0 %v173_v5 }
  0x3d   :  { %320 = vmatmul.f32.gmra.mxu1 %v959_v41  ;;  %394 = vmatpush.msra.mxu3 %v101_v31 }
  0x3f   :  { %395 = vmatpush.msra.mxu3 %v100_v32 }
  0x41   :  { %396 = vmatpush.msra.mxu3 %v99_v36 }
  0x43   :  { %352 = vmatmul.f32.gmra.mxu2 %v200_v11  ;;  %397 = vmatpush.msra.mxu3 %v98_v37 }
  0x44   :  { %731 = vmatmul.msk.f32.gmra.mxu0 %vm181_vm4, %v172_v13 }
  0x45   :  { %323 = vmatmul.f32.gmra.mxu1 %v978_v63  ;;  %398 = vmatpush.msra.mxu3 %v97_v39 }
  0x47   :  { %633 = vmatpush.msrb.mxu3 %v112_v17 }
  0x49   :  { %634 = vmatpush.msrb.mxu3 %v111_v18 }
  0x4b   :  { %733 = vmatmul.msk.f32.gmra.mxu2 %vm215_vm5, %v203_v15  ;;  %635 = vmatpush.msrb.mxu3 %v110_v19 }
  0x4c   :  { %297 = vmatmul.f32.gmra.mxu0 %v171_v16 }
  0x4d   :  { %326 = vmatmul.f32.gmra.mxu1 %v962_v44  ;;  %636 = vmatpush.msrb.mxu3 %v109_v20 }
  0x4f   :  { %637 = vmatpush.msrb.mxu3 %v108_v21  ;;  %v506_v21 = vld [vmem:[#allocation7 + $0xf8] sm:$0xff] }
  0x50   :  { %552 = vmatpush.msrb.mxu1 %v506_v21  ;;  %v476_v21 = vld [vmem:[#allocation7 + $0x8] sm:$0xff] }
  0x51   :  { %638 = vmatpush.msrb.mxu3 %v107_v22  ;;  %v505_v22 = vld [vmem:[#allocation7 + $0xf0] sm:$0xff] }
  0x52   :  { %553 = vmatpush.msrb.mxu1 %v505_v22  ;;  %v507_v22 = vld [vmem:[#allocation7 + $0x100] sm:$0xff] }
  0x53   :  { %639 = vmatpush.msrb.mxu3 %v106_v23  ;;  %v522_v23 = vld [vmem:[#allocation7 + $0x178] sm:$0xff] }
  0x54   :  { %581 = vmatpush.msrb.mxu2 %v522_v23  ;;  %v475_v23 = vld [vmem:[#allocation7] sm:$0xff] }
  0x55   :  { %640 = vmatpush.msrb.mxu3 %v105_v24  ;;  %v490_v24 = vld [vmem:[#allocation7 + $0x78] sm:$0xff] }
  0x56   :  { %523 = vmatpush.msrb.mxu0 %v490_v24 }
  0x57   :  { %641 = vmatpush.msrb.mxu3 %v104_v27  ;;  %v489_v27 = vld [vmem:[#allocation7 + $0x70] sm:$0xff] }
  0x58   :  { %524 = vmatpush.msrb.mxu0 %v489_v27 }
  0x59   :  { %642 = vmatpush.msrb.mxu3 %v103_v28  ;;  %v503_v28 = vld [vmem:[#allocation7 + $0xe0] sm:$0xff] }
  0x5b   :  { %643 = vmatpush.msrb.mxu3 %v102_v29  ;;  %v520_v29 = vld [vmem:[#allocation7 + $0x168] sm:$0xff] }
  0x5d   :  { %644 = vmatpush.msrb.mxu3 %v101_v31  ;;  %v502_v31 = vld [vmem:[#allocation7 + $0xd8] sm:$0xff] }
  0x5f   :  { %645 = vmatpush.msrb.mxu3 %v100_v32  ;;  %v519_v32 = vld [vmem:[#allocation7 + $0x160] sm:$0xff] }
  0x61   :  { %646 = vmatpush.msrb.mxu3 %v99_v36  ;;  %v518_v36 = vld [vmem:[#allocation7 + $0x158] sm:$0xff] }
  0x63   :  { %647 = vmatpush.msrb.mxu3 %v98_v37  ;;  %v486_v37 = vld [vmem:[#allocation7 + $0x58] sm:$0xff] }
  0x65   :  { %648 = vmatpush.msrb.mxu3 %v97_v39  ;;  %v517_v39 = vld [vmem:[#allocation7 + $0x150] sm:$0xff] }
  0xb1   :  { %v289_v25 = vpop.f32.mrf.mxu0 }
  0xb2   :  { %v318_v26 = vpop.f32.mrf.mxu1 }
  0xb3   :  { %v319_v46 = vadd.f32 %v318_v26, %v289_v25  ;;  %v504_v25 = vld [vmem:[#allocation7 + $0xe8] sm:$0xff]  ;;  %v521_v26 = vld [vmem:[#allocation7 + $0x170] sm:$0xff] }
  0xb4   :  { %554 = vmatpush.msrb.mxu1 %v504_v25  ;;  %582 = vmatpush.msrb.mxu2 %v521_v26 }
  0xb6   :  { %v347_v30 = vpop.f32.mrf.mxu2  ;;  %555 = vmatpush.msrb.mxu1 %v503_v28  ;;  %583 = vmatpush.msrb.mxu2 %v520_v29 }
  0xb7   :  { %v1021_v50 = vadd.f32 %v347_v30, %v319_v46  ;;  %v488_v30 = vld [vmem:[#allocation7 + $0x68] sm:$0xff] }
  0xb8   :  { %525 = vmatpush.msrb.mxu0 %v488_v30  ;;  %556 = vmatpush.msrb.mxu1 %v502_v31  ;;  %v484_v46 = vld [vmem:[#allocation7 + $0x48] sm:$0xff] }
  0xb9   :  { %v292_v34 = vpop.f32.mrf.mxu0  ;;  %v368_v57 = vmul.f32 %v1021_v50, %v1021_v50  ;;  %584 = vmatpush.msrb.mxu2 %v519_v32  ;;  %v409_v32 = vld [vmem:[%s1100_s3] sm:$0x1] }
  0xba   :  { %v321_v35 = vpop.f32.mrf.mxu1 }
  0xbb   :  { %v322_v45 = vadd.f32 %v321_v35, %v292_v34  ;;  %v487_v34 = vld [vmem:[#allocation7 + $0x60] sm:$0xff]  ;;  %v501_v35 = vld [vmem:[#allocation7 + $0xd0] sm:$0xff]  ;;  %585 = vmatpush.msrb.mxu2 %v518_v36 }
  0xbc   :  { %526 = vmatpush.msrb.mxu0 %v487_v34  ;;  %557 = vmatpush.msrb.mxu1 %v501_v35 }
  0xbd   :  { %586 = vmatpush.msrb.mxu2 %v517_v39 }
  0xbe   :  { %v350_v38 = vpop.f32.mrf.mxu2  ;;  %527 = vmatpush.msrb.mxu0 %v486_v37 }
  0xbf   :  { %v1019_v49 = vadd.f32 %v350_v38, %v322_v45  ;;  %v500_v38 = vld [vmem:[#allocation7 + $0xc8] sm:$0xff] }
  0xc0   :  { %558 = vmatpush.msrb.mxu1 %v500_v38  ;;  %v516_v45 = vld [vmem:[#allocation7 + $0x148] sm:$0xff] }
  0xc1   :  { %v295_v42 = vpop.f32.mrf.mxu0  ;;  %v369_v54 = vmul.f32 %v1019_v49, %v1019_v49  ;;  %v359_v58 = vadd.f32 %v1019_v49, %v1021_v50  ;;  %587 = vmatpush.msrb.mxu2 %v516_v45 }
  0xc2   :  { %v324_v43 = vpop.f32.mrf.mxu1 }
  0xc3   :  { %v325_v47 = vadd.f32 %v324_v43, %v295_v42  ;;  %v372_v61 = vadd.f32 %v369_v54, %v368_v57  ;;  %v485_v42 = vld [vmem:[#allocation7 + $0x50] sm:$0xff]  ;;  %v499_v43 = vld [vmem:[#allocation7 + $0xc0] sm:$0xff]  ;;  %v482_v57 = vld [vmem:[#allocation7 + $0x38] sm:$0xff] }
  0xc4   :  { %528 = vmatpush.msrb.mxu0 %v485_v42  ;;  %559 = vmatpush.msrb.mxu1 %v499_v43  ;;  %v745_v43 = vld [vmem:[%s1101_s4] ss:$0 sm:$0xff] }
  0xc6   :  { %v353_v48 = vpop.f32.mrf.mxu2  ;;  %529 = vmatpush.msrb.mxu0 %v484_v46 }
  0xc7   :  { %v1023_v51 = vadd.f32 %v353_v48, %v325_v47  ;;  %v498_v47 = vld [vmem:[#allocation7 + $0xb8] sm:$0xff]  ;;  %v515_v48 = vld [vmem:[#allocation7 + $0x140] sm:$0xff] }
  0xc8   :  { %560 = vmatpush.msrb.mxu1 %v498_v47  ;;  %588 = vmatpush.msrb.mxu2 %v515_v48 }
  0xc9   :  { %v298_v52 = vpop.f32.mrf.mxu0  ;;  %v370_v59 = vmul.f32 %v1023_v51, %v1023_v51  ;;  %v360_v62 = vadd.f32 %v359_v58, %v1023_v51 }
  0xca   :  { %v327_v53 = vpop.f32.mrf.mxu1 }
  0xcb   :  { %v328_v56 = vadd.f32 %v327_v53, %v298_v52  ;;  %v373_v2 = vadd.f32 %v372_v61, %v370_v59  ;;  %v483_v52 = vld [vmem:[#allocation7 + $0x40] sm:$0xff]  ;;  %v497_v53 = vld [vmem:[#allocation7 + $0xb0] sm:$0xff]  ;;  %v496_v59 = vld [vmem:[#allocation7 + $0xa8] sm:$0xff] }
  0xcc   :  { %530 = vmatpush.msrb.mxu0 %v483_v52  ;;  %561 = vmatpush.msrb.mxu1 %v497_v53  ;;  %v481_v61 = vld [vmem:[#allocation7 + $0x30] sm:$0xff] }
  0xce   :  { %v356_v60 = vpop.f32.mrf.mxu2  ;;  %531 = vmatpush.msrb.mxu0 %v482_v57  ;;  %562 = vmatpush.msrb.mxu1 %v496_v59 }
  0xcf   :  { %v1034_v0 = vadd.f32 %v356_v60, %v328_v56  ;;  %v514_v56 = vld [vmem:[#allocation7 + $0x138] sm:$0xff]  ;;  %v513_v60 = vld [vmem:[#allocation7 + $0x130] sm:$0xff] }
  0xd0   :  { %589 = vmatpush.msrb.mxu2 %v514_v56  ;;  %532 = vmatpush.msrb.mxu0 %v481_v61 }
  0xd1   :  { %v361_v3 = vadd.f32 %v360_v62, %v1034_v0  ;;  %v371_v4 = vmul.f32 %v1034_v0, %v1034_v0 }
  0xd2   :  { %590 = vmatpush.msrb.mxu2 %v513_v60 }
  0xd3   :  { %v362_v5 = vrot.slane %v361_v3, 4  ;;  %v374_v6 = vadd.f32 %v373_v2, %v371_v4  ;;  %v495_v2 = vld [vmem:[#allocation7 + $0xa0] sm:$0xff]  ;;  %v480_v4 = vld [vmem:[#allocation7 + $0x28] sm:$0xff] }
  0xd4   :  { %563 = vmatpush.msrb.mxu1 %v495_v2  ;;  %533 = vmatpush.msrb.mxu0 %v480_v4 }
  0xd5   :  { %v363_v7 = vadd.f32 %v362_v5, %v361_v3  ;;  %v375_v8 = vrot.slane %v374_v6, 4  ;;  %v512_v3 = vld [vmem:[#allocation7 + $0x128] sm:$0xff] }
  0xd6   :  { %591 = vmatpush.msrb.mxu2 %v512_v3 }
  0xd7   :  { %v364_v9 = vrot.slane %v363_v7, 2  ;;  %v376_v11 = vadd.f32 %v375_v8, %v374_v6  ;;  %v494_v6 = vld [vmem:[#allocation7 + $0x98] sm:$0xff]  ;;  %v479_v8 = vld [vmem:[#allocation7 + $0x20] sm:$0xff] }
  0xd8   :  { %564 = vmatpush.msrb.mxu1 %v494_v6  ;;  %534 = vmatpush.msrb.mxu0 %v479_v8 }
  0xd9   :  { %v365_v12 = vadd.f32 %v364_v9, %v363_v7  ;;  %v377_v13 = vrot.slane %v376_v11, 2  ;;  %v511_v7 = vld [vmem:[#allocation7 + $0x120] sm:$0xff] }
  0xda   :  { %592 = vmatpush.msrb.mxu2 %v511_v7 }
  0xdb   :  { %v366_v15 = vrot.slane %v365_v12, 1  ;;  %v378_v16 = vadd.f32 %v377_v13, %v376_v11  ;;  %v493_v11 = vld [vmem:[#allocation7 + $0x90] sm:$0xff]  ;;  %v478_v13 = vld [vmem:[#allocation7 + $0x18] sm:$0xff] }
  0xdc   :  { %565 = vmatpush.msrb.mxu1 %v493_v11  ;;  %535 = vmatpush.msrb.mxu0 %v478_v13 }
  0xdd   :  { %v379_v17 = vrot.slane %v378_v16, 1  ;;  %v367_v18 = vadd.f32 %v366_v15, %v365_v12  ;;  %v510_v12 = vld [vmem:[#allocation7 + $0x118] sm:$0xff] }
  0xde   :  { %593 = vmatpush.msrb.mxu2 %v510_v12 }
  0xdf   :  { %v380_v19 = vadd.f32 %v379_v17, %v378_v16  ;;  %v492_v16 = vld [vmem:[#allocation7 + $0x88] sm:$0xff]  ;;  %v509_v17 = vld [vmem:[#allocation7 + $0x110] sm:$0xff] }
  0xe0   :  { %566 = vmatpush.msrb.mxu1 %v492_v16  ;;  %594 = vmatpush.msrb.mxu2 %v509_v17 }
  0xe1   :  { %v382_v20 = vsel %vm381_vm6, %v367_v18, %v380_v19  ;;  %v477_v18 = vld [vmem:[#allocation7 + $0x10] sm:$0xff]  ;;  %v491_v19 = vld [vmem:[#allocation7 + $0x80] sm:$0xff] }
  0xe2   :  { %399 = vmatmul.f32.vlgmr.msra.gmra.mxu3 %v382_v20  ;;  %v508_v20 = vld [vmem:[#allocation7 + $0x108] sm:$0xff]  ;;  %536 = vmatpush.msrb.mxu0 %v477_v18 }
  0xe3   :  { %567 = vmatpush.msrb.mxu1 %v491_v19  ;;  %595 = vmatpush.msrb.mxu2 %v508_v20 }
  0xe4   :  { %537 = vmatpush.msrb.mxu0 %v476_v21 }
  0xe5   :  { %596 = vmatpush.msrb.mxu2 %v507_v22 }
  0xe6   :  { %538 = vmatpush.msrb.mxu0 %v475_v23 }
 0x165   :  { %v400_v54 = vpop.f32.mrf.mxu3 }
 0x166   :  { %v403_v58 = vmul.f32 0.001953125, %v400_v54 }
 0x168   :  { %v404_v62 = vmul.f32 %v403_v58, %v403_v58  ;;  %v427_v31 = vperm.slane %v403_v58, 0 }
 0x16a   :  { %v406_v5 = vrot.slane %v404_v62, 7  ;;  %v429_v36 = vsub.f32 %v1019_v49, %v427_v31  ;;  %v430_v37 = vsub.f32 %v1023_v51, %v427_v31  ;;  %v431_v38 = vsub.f32 %v1034_v0, %v427_v31 }
 0x16b   :  { %v428_v39 = vsub.f32 %v1021_v50, %v427_v31 }
 0x16c   :  { %v408_v9 = vsub.f32 %v403_v58, %v406_v5 }
 0x16e   :  { %v410_v15 = vadd.f32 1e-05, %v408_v9 }
 0x170   :  { %747 = vrsqrt.f32 %v410_v15  ;;  %vm417_vm8 = vweird.f32 %v410_v15 }
 0x176   :  { %v748_v24 = vpop.eup %747 }
 0x177   :  { %v412_v25 = vmul.f32 %v748_v24, %v410_v15  ;;  %vm418_vm7 = vweird.f32 %v748_v24 }
 0x178   :  { %vm419_vm9 = vmor %vm417_vm8, %vm418_vm7 }
 0x179   :  { %v413_v26 = vmul.f32 %v748_v24, %v412_v25 }
 0x17b   :  { %v414_v27 = vmul.f32 0.5, %v413_v26 }
 0x17d   :  { %v415_v28 = vsub.f32 1.5, %v414_v27 }
 0x17f   :  { %v416_v29 = vmul.f32 %v748_v24, %v415_v28 }
 0x181   :  { %v420_v30 = vsel %vm419_vm9, %v748_v24, %v416_v29 }
 0x182   :  { %422 = vst [vmem:[#allocation1] sm:$0xff] %v420_v30 }
 0x189   :  { %v424_v34 = vld [vmem:[#allocation1 + $0x1] ss:$9 sm:$0xff] }
 0x18a   :  { %v426_v35 = vmul.f32 %v424_v34, %v409_v32 }
 0x18c   :  { %v433_v42 = vperm.slane %v426_v35, 0 }
 0x18e   :  { %v435_v45 = vmul.f32 %v433_v42, %v428_v39  ;;  %v438_v46 = vmul.f32 %v433_v42, %v431_v38  ;;  %v436_v47 = vmul.f32 %v433_v42, %v429_v36  ;;  %v437_v48 = vmul.f32 %v433_v42, %v430_v37 }
 0x190   :  { %v443_v52 = vadd.f32 %v745_v43, %v435_v45  ;;  %v446_v53 = vadd.f32 %v745_v43, %v438_v46  ;;  %v444_v54 = vadd.f32 %v745_v43, %v436_v47  ;;  %v445_v51 = vadd.f32 %v745_v43, %v437_v48 }
 0x192   :  { %v447_v56 = vmax.f32 %v443_v52, 0.0  ;;  %v450_v49 = vmax.f32 %v446_v53, 0.0  ;;  %v448_v57 = vmax.f32 %v444_v54, 0.0  ;;  %v449_v62 = vmax.f32 %v445_v51, 0.0 }
 0x194   :  { %568 = vmatmul.f32.vlgmr.msrb.gmra.mxu1 %v447_v56  ;;  %v451_v0 = vrot.slane %v447_v56, 7  ;;  %v454_v58 = vrot.slane %v450_v49, 7  ;;  %v463_v50 = vrot.slane %v447_v56, 1  ;;  %v464_v59 = vrot.slane %v448_v57, 1 }
 0x195   :  { %v452_v2 = vrot.slane %v448_v57, 7  ;;  %v465_v3 = vrot.slane %v449_v62, 1  ;;  %v453_v6 = vrot.slane %v449_v62, 7  ;;  %v466_v7 = vrot.slane %v450_v49, 1 }
 0x196   :  { %v458_v60 = vsel %vm170_vm1, %v454_v58, %v451_v0  ;;  %v469_v61 = vsel %vm199_vm0, %v463_v50, %v464_v59 }
 0x197   :  { %734 = vmatmul.msk.f32.vlgmr.msrb.gmra.mxu0 %vm179_vm2, %v458_v60  ;;  %597 = vmatmul.f32.vlgmr.msrb.gmra.mxu2 %v469_v61  ;;  %v457_v4 = vsel %vm170_vm1, %v451_v0, %v452_v2  ;;  %v468_v5 = vsel %vm199_vm0, %v464_v59, %v465_v3  ;;  %v456_v55 = vsel %vm170_vm1, %v452_v2, %v453_v6 }
 0x198   :  { %v467_v8 = vsel %vm199_vm0, %v465_v3, %v466_v7  ;;  %v455_v9 = vsel %vm170_vm1, %v453_v6, %v454_v58  ;;  %v470_v1 = vsel %vm199_vm0, %v466_v7, %v463_v50 }
 0x19c   :  { %571 = vmatmul.f32.gmra.mxu1 %v448_v57 }
 0x19f   :  { %542 = vmatmul.f32.gmra.mxu0 %v457_v4  ;;  %736 = vmatmul.msk.f32.gmra.mxu2 %vm213_vm3, %v468_v5 }
 0x1a4   :  { %574 = vmatmul.f32.gmra.mxu1 %v449_v62 }
 0x1a7   :  { %735 = vmatmul.msk.f32.gmra.mxu0 %vm181_vm4, %v456_v55  ;;  %603 = vmatmul.f32.gmra.mxu2 %v467_v8  ;;  %v659_v55 = vld [vmem:[%s1102_s5] sm:$0x1]  ;;  %s885_s5 = smov [#allocation10]  }
 0x1ac   :  { %577 = vmatmul.f32.gmra.mxu1 %v450_v49 }
 0x1af   :  { %548 = vmatmul.f32.gmra.mxu0 %v455_v9  ;;  %737 = vmatmul.msk.f32.gmra.mxu2 %vm215_vm5, %v470_v1 }
 0x211   :  { %v569_v11 = vpop.f32.mrf.mxu1 }
 0x214   :  { %v540_v12 = vpop.f32.mrf.mxu0 }
 0x215   :  { %v570_v21 = vadd.f32 %v569_v11, %v540_v12 }
 0x219   :  { %v572_v15 = vpop.f32.mrf.mxu1 }
 0x21a   :  { %v598_v13 = vpop.f32.mrf.mxu2 }
 0x21b   :  { %v599_v33 = vadd.f32 %v598_v13, %v570_v21 }
 0x21c   :  { %v543_v16 = vpop.f32.mrf.mxu0 }
 0x21d   :  { %v573_v19 = vadd.f32 %v572_v15, %v543_v16  ;;  %v619_v27 = vmul.f32 %v599_v33, %v599_v33 }
 0x221   :  { %v575_v18 = vpop.f32.mrf.mxu1 }
 0x222   :  { %v601_v17 = vpop.f32.mrf.mxu2 }
 0x223   :  { %v1074_v22 = vadd.f32 %v601_v17, %v573_v19  ;;  %v746_v17 = vld [vmem:[%s1103_s6] ss:$0 sm:$0xff]  ;;  %s713_s6 = sshll.u32 %s885_s5, 4  ;;  %s714_s6 = int_to_ptr.vmem [resolvable:$true] %s713_s6 }
 0x224   :  { %v546_v10 = vpop.f32.mrf.mxu0 }
 0x225   :  { %v576_v23 = vadd.f32 %v575_v18, %v546_v10  ;;  %v620_v14 = vmul.f32 %v1074_v22, %v1074_v22  ;;  %v610_v28 = vadd.f32 %v1074_v22, %v599_v33 }
 0x227   :  { %v623_v32 = vadd.f32 %v620_v14, %v619_v27 }
 0x229   :  { %v578_v26 = vpop.f32.mrf.mxu1 }
 0x22a   :  { %v604_v20 = vpop.f32.mrf.mxu2 }
 0x22b   :  { %v605_v24 = vadd.f32 %v604_v20, %v576_v23 }
 0x22c   :  { %v549_v25 = vpop.f32.mrf.mxu0 }
 0x22d   :  { %v621_v29 = vmul.f32 %v605_v24, %v605_v24  ;;  %v579_v30 = vadd.f32 %v578_v26, %v549_v25  ;;  %v611_v34 = vadd.f32 %v610_v28, %v605_v24 }
 0x22f   :  { %v624_v36 = vadd.f32 %v623_v32, %v621_v29 }
 0x232   :  { %v607_v31 = vpop.f32.mrf.mxu2 }
 0x233   :  { %v608_v35 = vadd.f32 %v607_v31, %v579_v30 }
 0x235   :  { %v612_v37 = vadd.f32 %v611_v34, %v608_v35  ;;  %v622_v38 = vmul.f32 %v608_v35, %v608_v35 }
 0x237   :  { %v613_v39 = vrot.slane %v612_v37, 4  ;;  %v625_v42 = vadd.f32 %v624_v36, %v622_v38 }
 0x239   :  { %v614_v43 = vadd.f32 %v613_v39, %v612_v37  ;;  %v626_v45 = vrot.slane %v625_v42, 4 }
 0x23b   :  { %v615_v46 = vrot.slane %v614_v43, 2  ;;  %v627_v47 = vadd.f32 %v626_v45, %v625_v42 }
 0x23d   :  { %v616_v48 = vadd.f32 %v615_v46, %v614_v43  ;;  %v628_v52 = vrot.slane %v627_v47, 2 }
 0x23f   :  { %v617_v53 = vrot.slane %v616_v48, 1  ;;  %v629_v54 = vadd.f32 %v628_v52, %v627_v47 }
 0x241   :  { %v630_v56 = vrot.slane %v629_v54, 1  ;;  %v618_v49 = vadd.f32 %v617_v53, %v616_v48 }
 0x243   :  { %v631_v57 = vadd.f32 %v630_v56, %v629_v54 }
 0x245   :  { %v632_v51 = vsel %vm381_vm6, %v618_v49, %v631_v57 }
 0x246   :  { %649 = vmatmul.f32.vlgmr.msrb.gmra.mxu3 %v632_v51 }
 0x2c9   :  { %v650_v0 = vpop.f32.mrf.mxu3 }
 0x2ca   :  { %v653_v58 = vmul.f32 0.001953125, %v650_v0 }
 0x2cc   :  { %v654_v50 = vmul.f32 %v653_v58, %v653_v58  ;;  %v677_v8 = vperm.slane %v653_v58, 0 }
 0x2ce   :  { %v656_v59 = vrot.slane %v654_v50, 7  ;;  %v678_v11 = vsub.f32 %v599_v33, %v677_v8  ;;  %v679_v12 = vsub.f32 %v1074_v22, %v677_v8  ;;  %v680_v13 = vsub.f32 %v605_v24, %v677_v8 }
 0x2cf   :  { %v681_v15 = vsub.f32 %v608_v35, %v677_v8 }
 0x2d0   :  { %v658_v60 = vsub.f32 %v653_v58, %v656_v59 }
 0x2d2   :  { %v660_v61 = vadd.f32 1e-05, %v658_v60 }
 0x2d4   :  { %749 = vrsqrt.f32 %v660_v61  ;;  %vm667_vm11 = vweird.f32 %v660_v61 }
 0x2da   :  { %v750_v62 = vpop.eup %749 }
 0x2db   :  { %v662_v2 = vmul.f32 %v750_v62, %v660_v61  ;;  %vm668_vm10 = vweird.f32 %v750_v62 }
 0x2dc   :  { %vm669_vm12 = vmor %vm667_vm11, %vm668_vm10 }
 0x2dd   :  { %v663_v3 = vmul.f32 %v750_v62, %v662_v2 }
 0x2df   :  { %v664_v4 = vmul.f32 0.5, %v663_v3 }
 0x2e1   :  { %v665_v5 = vsub.f32 1.5, %v664_v4 }
 0x2e3   :  { %v666_v6 = vmul.f32 %v750_v62, %v665_v5 }
 0x2e5   :  { %v670_v7 = vsel %vm669_vm12, %v750_v62, %v666_v6 }
 0x2e6   :  { %672 = vst [vmem:[#allocation1] sm:$0xff] %v670_v7 }
 0x2ed   :  { %v674_v9 = vld [vmem:[#allocation1 + $0x1] ss:$9 sm:$0xff] }
 0x2ee   :  { %v676_v1 = vmul.f32 %v674_v9, %v659_v55 }
 0x2f0   :  { %v683_v16 = vperm.slane %v676_v1, 0 }
 0x2f2   :  { %v685_v10 = vmul.f32 %v683_v16, %v678_v11  ;;  %v686_v18 = vmul.f32 %v683_v16, %v679_v12  ;;  %v687_v19 = vmul.f32 %v683_v16, %v680_v13  ;;  %v688_v20 = vmul.f32 %v683_v16, %v681_v15 }
 0x2f4   :  { %v693_v21 = vadd.f32 %v746_v17, %v685_v10  ;;  %v694_v23 = vadd.f32 %v746_v17, %v686_v18  ;;  %v695_v25 = vadd.f32 %v746_v17, %v687_v19  ;;  %v696_v14 = vadd.f32 %v746_v17, %v688_v20 }
 0x2f6   :  { %v697_v26 = vadd.f32 %v693_v21, %v957_v40  ;;  %v698_v33 = vadd.f32 %v694_v23, %v959_v41  ;;  %v699_v22 = vadd.f32 %v695_v25, %v978_v63  ;;  %v700_v24 = vadd.f32 %v696_v14, %v962_v44 }
 0x2f8   :  { %v701_v27 = vmax.f32 %v697_v26, 0.0  ;;  %v702_v28 = vmax.f32 %v698_v33, 0.0  ;;  %v703_v29 = vmax.f32 %v699_v22, 0.0  ;;  %v704_v30 = vmax.f32 %v700_v24, 0.0 }
 0x2fa   :  { %705 = vst [vmem:[#allocation10] sm:$0xff] %v701_v27 }
 0x2fb   :  { %706 = vst [vmem:[#allocation10 + $0x8] sm:$0xff] %v702_v28 }
 0x2fc   :  { %707 = vst [vmem:[#allocation10 + $0x10] sm:$0xff] %v703_v29 }
 0x2fd   :  { %708 = vst [vmem:[#allocation10 + $0x18] sm:$0xff] %v704_v30 }
 0x2fe   :  { %721 = dma.vmem_to_hbm [thread:$0]  %s714_s6, 512, %s716_s9, [#allocation4], %s880_s13, %s880_s13, %s881_s14  }
 0x2ff   :  { %877 = dma.done.wait [#allocation4], 512  }
 0x300   :  { %878 = vsyncadd [#allocation4], 4294966784 }
 0x301   :  { %726 = vsyncpa [#allocation3], 1 }
 0x302   :  { %727 = vsyncpa [#allocation6], 1 }
 0x303   :  { %728 = vsyncpa [#allocation9], 1 }
 0x304   :  { %729 = vsyncpa [#allocation4], 1 }

</bundles_post_ra>
